<compile_context>
chip_gen: v7x
topology: tpu7x:2x2x1
jax: 0.10.0
libtpu: 0.0.40
codegen_flags: <defaults>
</compile_context>

<pallas_src>
import functools

import jax
import jax.numpy as jnp
from jax.experimental import pallas as pl
from jax.experimental.pallas import tpu as pltpu

KH = 224
KW = 224
AREA = KH * KW          # 50176 = 392 * 128  (exactly (8,128)-tileable)
SUB = AREA // 128       # 392


def _cdiv(a, b):
    return -(-a // b)


def _vmem_capacity_bytes():
    """Best-effort query of physical VMEM capacity; None if unknown."""
    try:
        info = pltpu.get_tpu_info()
    except Exception:
        return None
    for attr in ("vmem_capacity_bytes", "vmem_bytes", "vmem_size_bytes"):
        val = getattr(info, attr, None)
        if val:
            return int(val)
    return None


def _tpu_config():
    """Returns (total_vmem_budget_bytes, vmem_limit_bytes_or_None, tb_cap, two_cores).

    The budget is the TOTAL footprint allowed for all kernel buffers including
    double-buffering; the limit is what we hand to Mosaic (with headroom).
    """
    vmem_cap = _vmem_capacity_bytes()
    kind = ""
    try:
        kind = (jax.devices()[0].device_kind or "").lower()
    except Exception:
        pass
    is_v7 = "v7" in kind
    if is_v7 or (vmem_cap is not None and 48 << 20 <= vmem_cap < 96 << 20):
        # v7x: 64 MiB physical VMEM per TensorCore, 2 TensorCores per chip.
        return 34 << 20, 40 << 20, 32, True
    if vmem_cap is None:
        # Detection failed: stay safely inside v5e's 16 MiB default scoped
        # VMEM, and set the limit explicitly so Mosaic does not re-tile.
        return 12 << 20, 14 << 20, 32, is_v7
    if vmem_cap >= 96 << 20:
        # v4 / v5e / v6e: 128 MiB physical VMEM, single TensorCore.
        return 52 << 20, 60 << 20, 64, is_v7
    # Unknown small-VMEM part: be conservative, keep default scoped limit.
    return 7 << 20, None, 16, is_v7


def _choose_tb(R3, per_row_bytes, fixed_bytes, budget, tb_cap, two_cores):
    """Largest row-block that fits the VMEM budget.

    Constraints: the (tb, So) output block needs tb % 8 == 0 unless tb == R3;
    on 2-TensorCore parts use >= 2 blocks (preferably an even count) whenever
    R3 >= 16; prefer a tb that divides R3 (no clipped last block).
    """
    avail = max(per_row_bytes, budget - fixed_bytes)
    tb_fit = min(max(1, avail // per_row_bytes), tb_cap, R3)
    min_blocks = 2 if (two_cores and R3 >= 16) else 1
    if R3 <= tb_fit and min_blocks == 1:
        return R3                          # single exact block (block == full dim is layout-legal)
    # Multi-block: round to multiples of 8 for the output's second-minor dim.
    # (For absurdly wide inputs this may exceed the budget; the limit still
    # has headroom and such shapes are far outside the intended use.)
    tb_fit8 = max(8, (tb_fit // 8) * 8)
    nb_min = max(min_blocks, _cdiv(R3, tb_fit8))
    best = None
    for nb in range(nb_min, nb_min + 8):
        tb = min(tb_fit8, 8 * _cdiv(_cdiv(R3, nb), 8))
        nb_eff = _cdiv(R3, tb)
        if nb_eff < min_blocks:
            continue
        even_ok = (not two_cores) or nb_eff % 2 == 0   # balance the 2 TensorCores
        exact = R3 % tb == 0                           # no clipped last block
        score = (even_ok, -nb_eff, exact)              # big blocks first, then exactness
        if best is None or score > best[0]:
            best = (score, tb)
    return best[1] if best is not None else tb_fit8


def _global_pool_kernel(x_ref, o_ref, *, inv_area):
    # x_ref: (tb, 392, 128) -- one full 224x224 window per row, lane-exact.
    # o_ref: (tb, 128)      -- the window mean broadcast to all 128 lanes
    #                          (full-lane stores); the wrapper keeps [:, :1].
    col = jnp.sum(x_ref[...].astype(jnp.float32), axis=1)      # VPU: sublane sum -> (tb, 128)
    tot = jnp.sum(col, axis=1, keepdims=True)                  # XLU: lane reduce -> (tb, 1)
    o_ref[...] = jnp.broadcast_to(tot * inv_area, o_ref.shape).astype(o_ref.dtype)


def _segmented_pool_kernel(x_ref, sel_ref, o_ref, *, inv_area):
    # x_ref   : (tb, KH, Wo*KW)  slab of pooling windows streamed from HBM.
    # sel_ref : (Wo*KW, So)      0/1 segment selector (constant across grid,
    #                            fetched once: block index never changes).
    # o_ref   : (tb, So)         lane-dense window means; lanes >= Wo are zero.
    col = jnp.sum(x_ref[...].astype(jnp.float32), axis=1)      # VPU: sum over KH
    acc = jnp.dot(col, sel_ref[...],                           # MXU: segment-sum over KW
                  preferred_element_type=jnp.float32,
                  precision=jax.lax.Precision.HIGH)            # 0/1 sel => exact at HIGH
    o_ref[...] = (acc * inv_area).astype(o_ref.dtype)


def avgpool2d_224(x):
    """Equivalent of nn.AvgPool2d((224, 224)) on an NCHW tensor."""
    N, C, H, W = x.shape
    if H < KH or W < KW:
        raise ValueError("AvgPool2d((224, 224)) requires H >= 224 and W >= 224")
    Ho = H // KH
    Wo = W // KW
    if H != Ho * KH or W != Wo * KW:
        # floor mode: drop the trailing remainder (only copies when cropping).
        x = x[:, :, : Ho * KH, : Wo * KW]

    R3 = N * C * Ho                       # one pooling-row slab per (n, c, ho)
    itemsize = int(jnp.dtype(x.dtype).itemsize)
    budget, vmem_limit, tb_cap, two_cores = _tpu_config()
    inv_area = 1.0 / float(AREA)

    if Wo == 1:
        # ---- fast path: global 224x224 pool. Each slab is KH*KW = 50176
        # contiguous elements = (392, 128): lane-exact, no selector matmul.
        xr = x.reshape(R3, SUB, 128)      # pure reshape: contiguous, no transpose/pad
        per_row = 2 * (SUB * 128 * itemsize + 128 * itemsize)   # in + out, double-buffered
        if itemsize < 4:
            per_row += SUB * 128 * 4      # conservative: f32-cast temp may materialize
        tb = _choose_tb(R3, per_row, 0, budget, tb_cap, two_cores)
        num_blocks = _cdiv(R3, tb)

        kernel = functools.partial(_global_pool_kernel, inv_area=inv_area)
        pooled = pl.pallas_call(
            kernel,
            out_shape=jax.ShapeDtypeStruct((R3, 128), x.dtype),
            grid_spec=pltpu.PrefetchScalarGridSpec(
                num_scalar_prefetch=0,
                grid=(num_blocks,),
                in_specs=[pl.BlockSpec((tb, SUB, 128), lambda i: (i, 0, 0))],
                out_specs=pl.BlockSpec((tb, 128), lambda i: (i, 0)),
            ),
            compiler_params=pltpu.CompilerParams(
                dimension_semantics=("parallel",),
                vmem_limit_bytes=vmem_limit,
            ),
            cost_estimate=pl.CostEstimate(
                flops=R3 * (AREA + 128),
                transcendentals=0,
                bytes_accessed=itemsize * R3 * (AREA + 128),
            ),
        )(xr)
        return pooled[:, :1].reshape(N, C, Ho, Wo)

    # ---- general path: Wo > 1 windows per row slab.
    L = Wo * KW                           # lane extent of one slab (multiple of 8)
    L_pad = 128 * _cdiv(L, 128)           # lane-padded VMEM extent of the input block
    So = 128 * _cdiv(Wo, 128)             # lane-dense output width (multiple of 128)
    xr = x.reshape(R3, KH, L)             # pure reshape: contiguous, no transpose/pad

    # 0/1 selector: input lane j contributes to output lane j // KW.
    sel = (
        jnp.arange(L, dtype=jnp.int32)[:, None] // KW
        == jnp.arange(So, dtype=jnp.int32)[None, :]
    ).astype(jnp.float32)

    fixed = 2 * L * So * 4                # selector block (f32), double-buffered
    per_row = 2 * (KH * L_pad * itemsize + So * itemsize)
    if itemsize < 4:
        per_row += KH * L_pad * 4         # conservative: f32-cast temp may materialize
    tb = _choose_tb(R3, per_row, fixed, budget, tb_cap, two_cores)
    num_blocks = _cdiv(R3, tb)

    kernel = functools.partial(_segmented_pool_kernel, inv_area=inv_area)
    pooled = pl.pallas_call(
        kernel,
        out_shape=jax.ShapeDtypeStruct((R3, So), x.dtype),
        grid_spec=pltpu.PrefetchScalarGridSpec(
            num_scalar_prefetch=0,
            grid=(num_blocks,),
            in_specs=[
                pl.BlockSpec((tb, KH, L), lambda i: (i, 0, 0)),
                pl.BlockSpec((L, So), lambda i: (0, 0)),   # constant block: fetched once
            ],
            out_specs=pl.BlockSpec((tb, So), lambda i: (i, 0)),
        ),
        compiler_params=pltpu.CompilerParams(
            dimension_semantics=("parallel",),
            vmem_limit_bytes=vmem_limit,
        ),
        cost_estimate=pl.CostEstimate(
            flops=R3 * KH * L + 2 * R3 * L * So,
            transcendentals=0,
            bytes_accessed=itemsize * R3 * (KH * L + So) + 4 * L * So,
        ),
    )(xr, sel)
    return pooled[:, :Wo].reshape(N, C, Ho, Wo)


def _reference(x):
    N, C, H, W = x.shape
    Ho, Wo = H // KH, W // KW
    xc = x[:, :, : Ho * KH, : Wo * KW]
    return xc.reshape(N, C, Ho, KH, Wo, KW).mean(axis=(3, 5))


if __name__ == "__main__":
    key = jax.random.PRNGKey(0)

    # AvgPool2d((224, 224)) requires >= 224x224 spatial; keep N, C small.
    x1 = jax.random.normal(key, (2, 4, 224, 224), dtype=jnp.float32)
    out1 = jax.block_until_ready(avgpool2d_224(x1))
    assert out1.shape == (2, 4, 1, 1), out1.shape
    assert jnp.allclose(out1, _reference(x1), atol=1e-4, rtol=1e-4)

    # Multi-window case (Ho = Wo = 2) exercising the general selector path.
    x2 = jax.random.normal(jax.random.PRNGKey(0), (1, 2, 448, 448), dtype=jnp.float32)
    out2 = jax.block_until_ready(avgpool2d_224(x2))
    assert out2.shape == (1, 2, 2, 2), out2.shape
    assert jnp.allclose(out2, _reference(x2), atol=1e-4, rtol=1e-4)

    print("KERNEL_OK")
</pallas_src>

<mosaic_0001>
module attributes {stable_mosaic.version = 11 : i64} {
  func.func @_global_pool_kernel(%arg0: i32, %arg1: memref<8x392x128xf32, #tpu.memory_space<vmem>>, %arg2: memref<8x128xf32, #tpu.memory_space<vmem>>) attributes {dimension_semantics = [#tpu.dimension_semantics<parallel>], iteration_bounds = array<i64: 1>, scalar_prefetch = 0 : i64, scratch_operands = 0 : i64, tpu.core_type = #tpu.core_type<tc>, window_params = [{transform_indices = @transform_0, window_bounds = array<i64: 8, 392, 128>}, {transform_indices = @transform_1, window_bounds = array<i64: 8, 128>}]} {
    %c0 = arith.constant 0 : index
    %c0_0 = arith.constant 0 : index
    %c0_1 = arith.constant 0 : index
    %0 = vector.load %arg1[%c0, %c0_0, %c0_1] : memref<8x392x128xf32, #tpu.memory_space<vmem>>, vector<8x392x128xf32>
    %cst = arith.constant dense<0.000000e+00> : vector<8x128xf32>
    %1 = vector.multi_reduction <add>, %0, %cst [1] : vector<8x392x128xf32> to vector<8x128xf32>
    %cst_2 = arith.constant dense<0.000000e+00> : vector<8xf32>
    %2 = vector.multi_reduction <add>, %1, %cst_2 [1] : vector<8x128xf32> to vector<8xf32>
    %3 = vector.shape_cast %2 : vector<8xf32> to vector<8x1xf32>
    %cst_3 = arith.constant 1.99298465E-5 : f32
    %4 = vector.broadcast %cst_3 : f32 to vector<8x1xf32>
    %5 = arith.mulf %3, %4 : vector<8x1xf32>
    %6 = vector.shape_cast %5 : vector<8x1xf32> to vector<8x1xf32>
    %7 = vector.broadcast %6 : vector<8x1xf32> to vector<8x128xf32>
    %c0_4 = arith.constant 0 : index
    %c0_5 = arith.constant 0 : index
    %8 = vector.load %arg2[%c0_4, %c0_5] : memref<8x128xf32, #tpu.memory_space<vmem>>, vector<8x128xf32>
    tpu.vector_store %arg2[%c0_4, %c0_5], %7 {strides = array<i32>} : memref<8x128xf32, #tpu.memory_space<vmem>>, vector<8x128xf32>,
    return
  }
  func.func @transform_0(%arg0: i32) -> (i32, i32, i32) {
    %c0_i32 = arith.constant 0 : i32
    %c0_i32_0 = arith.constant 0 : i32
    %c0_i32_1 = arith.constant 0 : i32
    return %arg0, %c0_i32, %c0_i32_0 : i32, i32, i32
  }
  func.func @transform_1(%arg0: i32) -> (i32, i32) {
    %c0_i32 = arith.constant 0 : i32
    %c0_i32_0 = arith.constant 0 : i32
    return %arg0, %c0_i32 : i32, i32
  }
}

</mosaic_0001>

<bundles_post_ra>
// kernel: tpu_custom_call.1
= control target key start
LH: loop header
LB: loop body
LE: loop exit
PB: predicated region body
PF: predicated region fallthrough
CT: control target
= control target key end

     0   :  { %6 = vsyncpa [#allocation3], 0  ;;  %s979_s0 = inlined_call_operand.hbm [shape: f32[8,392,128], index: 0, kind: input, shape index: {}]   ;;  %s980_s1 = inlined_call_operand.hbm [shape: f32[8,128], index: 1, kind: output, shape index: {}]  }
   0x1   :  { %7 = vsyncpa [#allocation4], 0  ;;  %s941_s6 = smov [#allocation2]   ;;  %s893_s10 = scalar_lea.hbm %s979_s0, 50176 }
   0x2   :  { %s13_s7 = sshll.u32 %s941_s6, 4  ;;  %p894_p0 = scmp.ne.s32.totalorder %s979_s0, %s893_s10  ;;  %s14_s7 = int_to_ptr.vmem [resolvable:$true] %s13_s7 }
   0x3   :  { %p897_p1 = scmp.lt.u32.totalorder %s893_s10, %s979_s0 }
   0x5   :  { %p899_p2 = pnand %p897_p1, %p894_p0 }
   0x7   :  { %902 = shalt.err (!%p899_p2)
}
   0x8   :  { %s903_s15 = scalar_lea.vmem %s14_s7, 50176  ;;  %p908_p4 = scmp.lt.s32.totalorder %s14_s7, %s14_s7 }
   0x9   :  { %p904_p3 = scmp.ne.s32.totalorder %s14_s7, %s903_s15  ;;  %p909_p5 = scmp.lt.s32.totalorder %s903_s15, %s903_s15 }
   0xb   :  { %p910_p6 = por %p909_p5, %p908_p4 }
   0xd   :  { %p911_p7 = pnand %p910_p6, %p904_p3 }
   0xf   :  { %914 = shalt.err (!%p911_p7)
}
  0x10   :  { %s942_s16 = smov 128   ;;  %s943_s17 = smov 8  }
  0x11   :  { %19 = dma.hbm_to_vmem [thread:$0]  %s979_s0, 50176, %s14_s7, [#allocation3], %s942_s16, %s942_s16, %s943_s17  }
  0x12   :  { %937 = dma.done.wait [#allocation3], 50176  }
  0x13   :  { %938 = vsyncadd [#allocation3], 4294917120  ;;  %v23_v0 = vld [vmem:[#allocation2] sm:$0xff]  ;;  %v24_v1 = vld [vmem:[#allocation2 + $0x8] sm:$0xff]  ;;  %vm855_vm0 = vcmask 1041409   ;;  %vm857_vm1 = vcmask 1042434  }
  0x14   :  { %v25_v2 = vld [vmem:[#allocation2 + $0x10] sm:$0xff]  ;;  %v415_v3 = vadd.f32 %v24_v1, %v23_v0  ;;  %v26_v4 = vld [vmem:[#allocation2 + $0x18] sm:$0xff]  ;;  %v27_v6 = vld [vmem:[#allocation2 + $0x20] sm:$0xff]  ;;  %vm859_vm2 = vcmask 1043459   ;;  %vm861_vm3 = vcmask 1044484   ;;  %vm863_vm4 = vcmask 1045509  }
  0x15   :  { %v28_v8 = vld [vmem:[#allocation2 + $0x28] sm:$0xff]  ;;  %v29_v10 = vld [vmem:[#allocation2 + $0x30] sm:$0xff]  ;;  %v30_v12 = vld [vmem:[#allocation2 + $0x38] sm:$0xff]  ;;  %vm865_vm5 = vcmask 1046534   ;;  %vm867_vm6 = vcmask 1047559   ;;  %s944_s0 = smov [#allocation5]  }
  0x16   :  { %v416_v5 = vadd.f32 %v415_v3, %v25_v2  ;;  %v31_v14 = vld [vmem:[#allocation2 + $0x40] sm:$0xff]  ;;  %v72_v16 = vld [vmem:[#allocation2 + $0x188] sm:$0xff]  ;;  %v73_v17 = vld [vmem:[#allocation2 + $0x190] sm:$0xff]  ;;  %s880_s20 = sshll.u32 %s944_s0, 4  ;;  %s881_s20 = int_to_ptr.vmem [resolvable:$true] %s880_s20 }
  0x17   :  { %v32_v19 = vld [vmem:[#allocation2 + $0x48] sm:$0xff]  ;;  %v74_v20 = vld [vmem:[#allocation2 + $0x198] sm:$0xff]  ;;  %v469_v21 = vadd.f32 %v73_v17, %v72_v16  ;;  %v75_v22 = vld [vmem:[#allocation2 + $0x1a0] sm:$0xff]  ;;  %s915_s21 = scalar_lea.vmem %s881_s20, 128  ;;  %p920_p9 = scmp.lt.s32.totalorder %s881_s20, %s881_s20 }
  0x18   :  { %v417_v7 = vadd.f32 %v416_v5, %v26_v4  ;;  %v76_v24 = vld [vmem:[#allocation2 + $0x1a8] sm:$0xff]  ;;  %v33_v26 = vld [vmem:[#allocation2 + $0x50] sm:$0xff]  ;;  %v78_v30 = vld [vmem:[#allocation2 + $0x1b8] sm:$0xff]  ;;  %p916_p8 = scmp.ne.s32.totalorder %s881_s20, %s915_s21  ;;  %p921_p10 = scmp.lt.s32.totalorder %s915_s21, %s915_s21 }
  0x19   :  { %v470_v23 = vadd.f32 %v469_v21, %v74_v20  ;;  %v77_v28 = vld [vmem:[#allocation2 + $0x1b0] sm:$0xff]  ;;  %v34_v32 = vld [vmem:[#allocation2 + $0x58] sm:$0xff]  ;;  %v79_v34 = vld [vmem:[#allocation2 + $0x1c0] sm:$0xff] }
  0x1a   :  { %v418_v9 = vadd.f32 %v417_v7, %v27_v6  ;;  %v80_v36 = vld [vmem:[#allocation2 + $0x1c8] sm:$0xff]  ;;  %v35_v38 = vld [vmem:[#allocation2 + $0x60] sm:$0xff]  ;;  %v81_v40 = vld [vmem:[#allocation2 + $0x1d0] sm:$0xff]  ;;  %p922_p11 = por %p921_p10, %p920_p9 }
  0x1b   :  { %v471_v27 = vadd.f32 %v470_v23, %v75_v22  ;;  %v82_v42 = vld [vmem:[#allocation2 + $0x1d8] sm:$0xff]  ;;  %v121_v43 = vld [vmem:[#allocation2 + $0x310] sm:$0xff]  ;;  %v36_v45 = vld [vmem:[#allocation2 + $0x68] sm:$0xff] }
  0x1c   :  { %v419_v11 = vadd.f32 %v418_v9, %v28_v8  ;;  %v122_v46 = vld [vmem:[#allocation2 + $0x318] sm:$0xff]  ;;  %v123_v47 = vld [vmem:[#allocation2 + $0x320] sm:$0xff]  ;;  %v124_v51 = vld [vmem:[#allocation2 + $0x328] sm:$0xff]  ;;  %p923_p12 = pnand %p922_p11, %p916_p8 }
  0x1d   :  { %v472_v29 = vadd.f32 %v471_v27, %v76_v24  ;;  %v83_v49 = vld [vmem:[#allocation2 + $0x1e0] sm:$0xff]  ;;  %v523_v50 = vadd.f32 %v122_v46, %v121_v43  ;;  %v84_v53 = vld [vmem:[#allocation2 + $0x1e8] sm:$0xff]  ;;  %v37_v56 = vld [vmem:[#allocation2 + $0x70] sm:$0xff] }
  0x1e   :  { %v420_v13 = vadd.f32 %v419_v11, %v29_v10  ;;  %v125_v57 = vld [vmem:[#allocation2 + $0x330] sm:$0xff]  ;;  %v126_v61 = vld [vmem:[#allocation2 + $0x338] sm:$0xff]  ;;  %v127_v3 = vld [vmem:[#allocation2 + $0x340] sm:$0xff] }
  0x1f   :  { %v473_v33 = vadd.f32 %v472_v29, %v77_v28  ;;  %v524_v55 = vadd.f32 %v523_v50, %v123_v47  ;;  %v85_v59 = vld [vmem:[#allocation2 + $0x1f0] sm:$0xff]  ;;  %v86_v63 = vld [vmem:[#allocation2 + $0x1f8] sm:$0xff]  ;;  %v87_v5 = vld [vmem:[#allocation2 + $0x200] sm:$0xff] }
  0x20   :  { %v421_v15 = vadd.f32 %v420_v13, %v30_v12  ;;  %v38_v2 = vld [vmem:[#allocation2 + $0x78] sm:$0xff]  ;;  %v128_v7 = vld [vmem:[#allocation2 + $0x348] sm:$0xff]  ;;  %v39_v11 = vld [vmem:[#allocation2 + $0x80] sm:$0xff] }
  0x21   :  { %v474_v35 = vadd.f32 %v473_v33, %v78_v30  ;;  %v525_v60 = vadd.f32 %v524_v55, %v124_v51  ;;  %v129_v12 = vld [vmem:[#allocation2 + $0x350] sm:$0xff]  ;;  %v130_v16 = vld [vmem:[#allocation2 + $0x358] sm:$0xff]  ;;  %v40_v17 = vld [vmem:[#allocation2 + $0x88] sm:$0xff] }
  0x22   :  { %v422_v18 = vadd.f32 %v421_v15, %v31_v14  ;;  %v88_v14 = vld [vmem:[#allocation2 + $0x208] sm:$0xff]  ;;  %v170_v21 = vld [vmem:[#allocation2 + $0x498] sm:$0xff]  ;;  %v171_v22 = vld [vmem:[#allocation2 + $0x4a0] sm:$0xff] }
  0x23   :  { %v475_v39 = vadd.f32 %v474_v35, %v79_v34  ;;  %v526_v1 = vadd.f32 %v525_v60, %v125_v57  ;;  %v172_v23 = vld [vmem:[#allocation2 + $0x4a8] sm:$0xff]  ;;  %v577_v27 = vadd.f32 %v171_v22, %v170_v21  ;;  %v173_v29 = vld [vmem:[#allocation2 + $0x4b0] sm:$0xff]  ;;  %v174_v35 = vld [vmem:[#allocation2 + $0x4b8] sm:$0xff] }
  0x24   :  { %v423_v25 = vadd.f32 %v422_v18, %v32_v19  ;;  %v131_v18 = vld [vmem:[#allocation2 + $0x360] sm:$0xff]  ;;  %v132_v28 = vld [vmem:[#allocation2 + $0x368] sm:$0xff]  ;;  %v41_v33 = vld [vmem:[#allocation2 + $0x90] sm:$0xff] }
  0x25   :  { %v476_v41 = vadd.f32 %v475_v39, %v80_v36  ;;  %v527_v6 = vadd.f32 %v526_v1, %v126_v61  ;;  %v133_v34 = vld [vmem:[#allocation2 + $0x370] sm:$0xff]  ;;  %v135_v46 = vld [vmem:[#allocation2 + $0x380] sm:$0xff]  ;;  %v176_v47 = vld [vmem:[#allocation2 + $0x4c8] sm:$0xff] }
  0x26   :  { %v424_v31 = vadd.f32 %v423_v25, %v33_v26  ;;  %v89_v25 = vld [vmem:[#allocation2 + $0x210] sm:$0xff]  ;;  %v43_v57 = vld [vmem:[#allocation2 + $0xa0] sm:$0xff]  ;;  %v92_v61 = vld [vmem:[#allocation2 + $0x228] sm:$0xff] }
  0x27   :  { %v477_v48 = vadd.f32 %v476_v41, %v81_v40  ;;  %v528_v10 = vadd.f32 %v527_v6, %v127_v3  ;;  %v134_v40 = vld [vmem:[#allocation2 + $0x378] sm:$0xff]  ;;  %v175_v41 = vld [vmem:[#allocation2 + $0x4c0] sm:$0xff] }
  0x28   :  { %v425_v37 = vadd.f32 %v424_v31, %v34_v32  ;;  %v578_v32 = vadd.f32 %v577_v27, %v172_v23  ;;  %v179_v1 = vld [vmem:[#allocation2 + $0x4e0] sm:$0xff] }
  0x29   :  { %v478_v52 = vadd.f32 %v477_v48, %v82_v42  ;;  %v529_v15 = vadd.f32 %v528_v10, %v128_v7  ;;  %v139_v3 = vld [vmem:[#allocation2 + $0x3a0] sm:$0xff]  ;;  %v180_v7 = vld [vmem:[#allocation2 + $0x4e8] sm:$0xff] }
  0x2a   :  { %v426_v44 = vadd.f32 %v425_v37, %v35_v38  ;;  %v90_v37 = vld [vmem:[#allocation2 + $0x218] sm:$0xff]  ;;  %v579_v39 = vadd.f32 %v578_v32, %v173_v29 }
  0x2b   :  { %v479_v58 = vadd.f32 %v478_v52, %v83_v49  ;;  %v530_v20 = vadd.f32 %v529_v15, %v129_v12  ;;  %v91_v49 = vld [vmem:[#allocation2 + $0x220] sm:$0xff]  ;;  %v136_v52 = vld [vmem:[#allocation2 + $0x388] sm:$0xff]  ;;  %v221_v12 = vld [vmem:[#allocation2 + $0x630] sm:$0xff] }
  0x2c   :  { %v427_v54 = vadd.f32 %v426_v44, %v36_v45  ;;  %v580_v44 = vadd.f32 %v579_v39, %v174_v35  ;;  %v42_v45 = vld [vmem:[#allocation2 + $0x98] sm:$0xff] }
  0x2d   :  { %v480_v62 = vadd.f32 %v479_v58, %v84_v53  ;;  %v531_v26 = vadd.f32 %v530_v20, %v130_v16  ;;  %v177_v53 = vld [vmem:[#allocation2 + $0x4d0] sm:$0xff]  ;;  %v140_v16 = vld [vmem:[#allocation2 + $0x3a8] sm:$0xff]  ;;  %v142_v32 = vld [vmem:[#allocation2 + $0x3b8] sm:$0xff] }
  0x2e   :  { %v428_v0 = vadd.f32 %v427_v54, %v37_v56  ;;  %v581_v51 = vadd.f32 %v580_v44, %v175_v41  ;;  %v137_v58 = vld [vmem:[#allocation2 + $0x390] sm:$0xff]  ;;  %v46_v35 = vld [vmem:[#allocation2 + $0xb8] sm:$0xff]  ;;  %v184_v41 = vld [vmem:[#allocation2 + $0x508] sm:$0xff] }
  0x2f   :  { %v481_v4 = vadd.f32 %v480_v62, %v85_v59  ;;  %v532_v31 = vadd.f32 %v531_v26, %v131_v18  ;;  %v178_v59 = vld [vmem:[#allocation2 + $0x4d8] sm:$0xff]  ;;  %v223_v26 = vld [vmem:[#allocation2 + $0x640] sm:$0xff] }
  0x30   :  { %v429_v9 = vadd.f32 %v428_v0, %v38_v2  ;;  %v582_v56 = vadd.f32 %v581_v51, %v176_v47  ;;  %v138_v0 = vld [vmem:[#allocation2 + $0x398] sm:$0xff]  ;;  %v44_v2 = vld [vmem:[#allocation2 + $0xa8] sm:$0xff]  ;;  %v95_v44 = vld [vmem:[#allocation2 + $0x240] sm:$0xff] }
  0x31   :  { %v482_v8 = vadd.f32 %v481_v4, %v86_v63  ;;  %v533_v38 = vadd.f32 %v532_v31, %v132_v28  ;;  %v222_v18 = vld [vmem:[#allocation2 + $0x638] sm:$0xff] }
  0x32   :  { %v430_v19 = vadd.f32 %v429_v9, %v39_v11  ;;  %v583_v63 = vadd.f32 %v582_v56, %v177_v53  ;;  %v220_v9 = vld [vmem:[#allocation2 + $0x628] sm:$0xff]  ;;  %v93_v11 = vld [vmem:[#allocation2 + $0x230] sm:$0xff]  ;;  %v94_v28 = vld [vmem:[#allocation2 + $0x238] sm:$0xff] }
  0x33   :  { %v483_v13 = vadd.f32 %v482_v8, %v87_v5  ;;  %v534_v43 = vadd.f32 %v533_v38, %v133_v34  ;;  %v219_v8 = vld [vmem:[#allocation2 + $0x620] sm:$0xff]  ;;  %v224_v34 = vld [vmem:[#allocation2 + $0x648] sm:$0xff]  ;;  %v186_v56 = vld [vmem:[#allocation2 + $0x518] sm:$0xff] }
  0x34   :  { %v431_v30 = vadd.f32 %v430_v19, %v40_v17  ;;  %v584_v6 = vadd.f32 %v583_v63, %v178_v59  ;;  %v631_v15 = vadd.f32 %v220_v9, %v219_v8  ;;  %v181_v17 = vld [vmem:[#allocation2 + $0x4f0] sm:$0xff]  ;;  %v96_v59 = vld [vmem:[#allocation2 + $0x248] sm:$0xff] }
  0x35   :  { %v484_v24 = vadd.f32 %v483_v13, %v88_v14  ;;  %v535_v50 = vadd.f32 %v534_v43, %v134_v40  ;;  %v45_v19 = vld [vmem:[#allocation2 + $0xb0] sm:$0xff]  ;;  %v143_v40 = vld [vmem:[#allocation2 + $0x3c0] sm:$0xff]  ;;  %v228_v63 = vld [vmem:[#allocation2 + $0x668] sm:$0xff] }
  0x36   :  { %v432_v42 = vadd.f32 %v431_v30, %v41_v33  ;;  %v585_v14 = vadd.f32 %v584_v6, %v179_v1  ;;  %v632_v23 = vadd.f32 %v631_v15, %v221_v12  ;;  %v183_v33 = vld [vmem:[#allocation2 + $0x500] sm:$0xff]  ;;  %v145_v1 = vld [vmem:[#allocation2 + $0x3d0] sm:$0xff]  ;;  %v188_v6 = vld [vmem:[#allocation2 + $0x528] sm:$0xff] }
  0x37   :  { %v485_v36 = vadd.f32 %v484_v24, %v89_v25  ;;  %v536_v55 = vadd.f32 %v535_v50, %v135_v46  ;;  %v141_v24 = vld [vmem:[#allocation2 + $0x3b0] sm:$0xff]  ;;  %v182_v25 = vld [vmem:[#allocation2 + $0x4f8] sm:$0xff]  ;;  %v47_v50 = vld [vmem:[#allocation2 + $0xc0] sm:$0xff] }
  0x38   :  { %v433_v54 = vadd.f32 %v432_v42, %v42_v45  ;;  %v586_v22 = vadd.f32 %v585_v14, %v180_v7  ;;  %v633_v31 = vadd.f32 %v632_v23, %v222_v18  ;;  %v225_v42 = vld [vmem:[#allocation2 + $0x650] sm:$0xff]  ;;  %v268_v8 = vld [vmem:[#allocation2 + $0x7a8] sm:$0xff]  ;;  %v270_v12 = vld [vmem:[#allocation2 + $0x7b8] sm:$0xff] }
  0x39   :  { %v486_v48 = vadd.f32 %v485_v36, %v90_v37  ;;  %v537_v62 = vadd.f32 %v536_v55, %v136_v52  ;;  %v144_v55 = vld [vmem:[#allocation2 + $0x3c8] sm:$0xff]  ;;  %v229_v7 = vld [vmem:[#allocation2 + $0x670] sm:$0xff] }
  0x3a   :  { %v434_v4 = vadd.f32 %v433_v54, %v43_v57  ;;  %v587_v30 = vadd.f32 %v586_v22, %v181_v17  ;;  %v634_v39 = vadd.f32 %v633_v31, %v223_v26  ;;  %v227_v57 = vld [vmem:[#allocation2 + $0x660] sm:$0xff]  ;;  %v189_v15 = vld [vmem:[#allocation2 + $0x530] sm:$0xff] }
  0x3b   :  { %v487_v60 = vadd.f32 %v486_v48, %v91_v49  ;;  %v538_v5 = vadd.f32 %v537_v62, %v137_v58  ;;  %v185_v48 = vld [vmem:[#allocation2 + $0x510] sm:$0xff]  ;;  %v226_v49 = vld [vmem:[#allocation2 + $0x658] sm:$0xff]  ;;  %v187_v62 = vld [vmem:[#allocation2 + $0x520] sm:$0xff] }
  0x3c   :  { %v435_v20 = vadd.f32 %v434_v4, %v44_v2  ;;  %v588_v38 = vadd.f32 %v587_v30, %v182_v25  ;;  %v635_v47 = vadd.f32 %v634_v39, %v224_v34  ;;  %v49_v18 = vld [vmem:[#allocation2 + $0xd0] sm:$0xff]  ;;  %v190_v25 = vld [vmem:[#allocation2 + $0x538] sm:$0xff]  ;;  %v231_v26 = vld [vmem:[#allocation2 + $0x680] sm:$0xff] }
  0x3d   :  { %v488_v10 = vadd.f32 %v487_v60, %v92_v61  ;;  %v539_v13 = vadd.f32 %v538_v5, %v138_v0  ;;  %v48_v0 = vld [vmem:[#allocation2 + $0xc8] sm:$0xff] }
  0x3e   :  { %v436_v36 = vadd.f32 %v435_v20, %v45_v19  ;;  %v589_v46 = vadd.f32 %v588_v38, %v183_v33  ;;  %v636_v54 = vadd.f32 %v635_v47, %v225_v42  ;;  %v271_v19 = vld [vmem:[#allocation2 + $0x7c0] sm:$0xff]  ;;  %v272_v30 = vld [vmem:[#allocation2 + $0x7c8] sm:$0xff] }
  0x3f   :  { %v540_v21 = vadd.f32 %v539_v13, %v139_v3  ;;  %v489_v27 = vadd.f32 %v488_v10, %v93_v11  ;;  %v97_v10 = vld [vmem:[#allocation2 + $0x250] sm:$0xff]  ;;  %v191_v33 = vld [vmem:[#allocation2 + $0x540] sm:$0xff]  ;;  %v232_v34 = vld [vmem:[#allocation2 + $0x688] sm:$0xff] }
  0x40   :  { %v437_v51 = vadd.f32 %v436_v36, %v46_v35  ;;  %v590_v53 = vadd.f32 %v589_v46, %v184_v41  ;;  %v637_v61 = vadd.f32 %v636_v54, %v226_v49  ;;  %v269_v11 = vld [vmem:[#allocation2 + $0x7b0] sm:$0xff]  ;;  %v50_v36 = vld [vmem:[#allocation2 + $0xd8] sm:$0xff]  ;;  %v147_v42 = vld [vmem:[#allocation2 + $0x3e0] sm:$0xff] }
  0x41   :  { %v541_v29 = vadd.f32 %v540_v21, %v140_v16  ;;  %v490_v43 = vadd.f32 %v489_v27, %v94_v28  ;;  %v230_v16 = vld [vmem:[#allocation2 + $0x678] sm:$0xff]  ;;  %v685_v17 = vadd.f32 %v269_v11, %v268_v8  ;;  %v99_v47 = vld [vmem:[#allocation2 + $0x260] sm:$0xff]  ;;  %v277_v11 = vld [vmem:[#allocation2 + $0x7f0] sm:$0xff] }
  0x42   :  { %v591_v60 = vadd.f32 %v590_v53, %v185_v48  ;;  %v438_v2 = vadd.f32 %v437_v51, %v47_v50  ;;  %v638_v5 = vadd.f32 %v637_v61, %v227_v57  ;;  %v274_v48 = vld [vmem:[#allocation2 + $0x7d8] sm:$0xff]  ;;  %v193_v51 = vld [vmem:[#allocation2 + $0x550] sm:$0xff]  ;;  %v51_v54 = vld [vmem:[#allocation2 + $0xe0] sm:$0xff] }
  0x43   :  { %v542_v37 = vadd.f32 %v541_v29, %v141_v24  ;;  %v491_v58 = vadd.f32 %v490_v43, %v95_v44  ;;  %v146_v24 = vld [vmem:[#allocation2 + $0x3d8] sm:$0xff]  ;;  %v686_v28 = vadd.f32 %v685_v17, %v270_v12  ;;  %v192_v43 = vld [vmem:[#allocation2 + $0x548] sm:$0xff]  ;;  %v233_v44 = vld [vmem:[#allocation2 + $0x690] sm:$0xff] }
  0x44   :  { %v592_v4 = vadd.f32 %v591_v60, %v186_v56  ;;  %v639_v14 = vadd.f32 %v638_v5, %v228_v63  ;;  %v439_v20 = vadd.f32 %v438_v2, %v48_v0  ;;  %v98_v29 = vld [vmem:[#allocation2 + $0x258] sm:$0xff]  ;;  %v148_v60 = vld [vmem:[#allocation2 + $0x3e8] sm:$0xff]  ;;  %v237_v17 = vld [vmem:[#allocation2 + $0x6b0] sm:$0xff] }
  0x45   :  { %v543_v45 = vadd.f32 %v542_v37, %v142_v32  ;;  %v492_v9 = vadd.f32 %v491_v58, %v96_v59  ;;  %v687_v35 = vadd.f32 %v686_v28, %v271_v19  ;;  %v273_v37 = vld [vmem:[#allocation2 + $0x7d0] sm:$0xff]  ;;  %v194_v61 = vld [vmem:[#allocation2 + $0x558] sm:$0xff]  ;;  %v276_v2 = vld [vmem:[#allocation2 + $0x7e8] sm:$0xff] }
  0x46   :  { %v593_v13 = vadd.f32 %v592_v4, %v187_v62  ;;  %v640_v23 = vadd.f32 %v639_v14, %v229_v7  ;;  %v440_v38 = vadd.f32 %v439_v20, %v49_v18  ;;  %v235_v62 = vld [vmem:[#allocation2 + $0x6a0] sm:$0xff]  ;;  %v52_v5 = vld [vmem:[#allocation2 + $0xe8] sm:$0xff]  ;;  %v278_v18 = vld [vmem:[#allocation2 + $0x7f8] sm:$0xff] }
  0x47   :  { %v544_v52 = vadd.f32 %v543_v45, %v143_v40  ;;  %v493_v27 = vadd.f32 %v492_v9, %v97_v10  ;;  %v688_v46 = vadd.f32 %v687_v35, %v272_v30  ;;  %v236_v7 = vld [vmem:[#allocation2 + $0x6a8] sm:$0xff]  ;;  %v101_v9 = vld [vmem:[#allocation2 + $0x270] sm:$0xff] }
  0x48   :  { %v594_v22 = vadd.f32 %v593_v13, %v188_v6  ;;  %v641_v32 = vadd.f32 %v640_v23, %v230_v16  ;;  %v441_v56 = vadd.f32 %v440_v38, %v50_v36  ;;  %v195_v6 = vld [vmem:[#allocation2 + $0x560] sm:$0xff]  ;;  %v149_v10 = vld [vmem:[#allocation2 + $0x3f0] sm:$0xff]  ;;  %v196_v16 = vld [vmem:[#allocation2 + $0x568] sm:$0xff] }
  0x49   :  { %v545_v3 = vadd.f32 %v544_v52, %v144_v55  ;;  %v494_v45 = vadd.f32 %v493_v27, %v98_v29  ;;  %v234_v52 = vld [vmem:[#allocation2 + $0x698] sm:$0xff]  ;;  %v689_v53 = vadd.f32 %v688_v46, %v273_v37  ;;  %v275_v55 = vld [vmem:[#allocation2 + $0x7e0] sm:$0xff]  ;;  %v53_v30 = vld [vmem:[#allocation2 + $0xf0] sm:$0xff] }
  0x4a   :  { %v595_v31 = vadd.f32 %v594_v22, %v189_v15  ;;  %v642_v41 = vadd.f32 %v641_v32, %v231_v26  ;;  %v442_v12 = vadd.f32 %v441_v56, %v51_v54  ;;  %v318_v22 = vld [vmem:[#allocation2 + $0x938] sm:$0xff]  ;;  %v319_v23 = vld [vmem:[#allocation2 + $0x940] sm:$0xff]  ;;  %v197_v26 = vld [vmem:[#allocation2 + $0x570] sm:$0xff] }
  0x4b   :  { %v546_v21 = vadd.f32 %v545_v3, %v145_v1  ;;  %v495_v63 = vadd.f32 %v494_v45, %v99_v47  ;;  %v690_v0 = vadd.f32 %v689_v53, %v274_v48  ;;  %v100_v1 = vld [vmem:[#allocation2 + $0x268] sm:$0xff]  ;;  %v238_v27 = vld [vmem:[#allocation2 + $0x6b8] sm:$0xff]  ;;  %v321_v45 = vld [vmem:[#allocation2 + $0x950] sm:$0xff] }
  0x4c   :  { %v596_v40 = vadd.f32 %v595_v31, %v190_v25  ;;  %v643_v50 = vadd.f32 %v642_v41, %v232_v34  ;;  %v279_v31 = vld [vmem:[#allocation2 + $0x800] sm:$0xff]  ;;  %v320_v32 = vld [vmem:[#allocation2 + $0x948] sm:$0xff]  ;;  %v150_v37 = vld [vmem:[#allocation2 + $0x3f8] sm:$0xff] }
  0x4d   :  { %v547_v39 = vadd.f32 %v546_v21, %v146_v24  ;;  %v691_v8 = vadd.f32 %v690_v0, %v275_v55  ;;  %v496_v19 = vadd.f32 %v495_v63, %v100_v1  ;;  %v317_v21 = vld [vmem:[#allocation2 + $0x930] sm:$0xff]  ;;  %v198_v38 = vld [vmem:[#allocation2 + $0x578] sm:$0xff]  ;;  %v240_v48 = vld [vmem:[#allocation2 + $0x6c8] sm:$0xff] }
  0x4e   :  { %v597_v49 = vadd.f32 %v596_v40, %v191_v33  ;;  %v644_v59 = vadd.f32 %v643_v50, %v233_v44  ;;  %v739_v29 = vadd.f32 %v318_v22, %v317_v21  ;;  %v443_v33 = vadd.f32 %v442_v12, %v52_v5  ;;  %v280_v44 = vld [vmem:[#allocation2 + $0x808] sm:$0xff]  ;;  %v322_v53 = vld [vmem:[#allocation2 + $0x958] sm:$0xff]  ;;  %v103_v0 = vld [vmem:[#allocation2 + $0x280] sm:$0xff] }
  0x4f   :  { %v548_v57 = vadd.f32 %v547_v39, %v147_v42  ;;  %v692_v20 = vadd.f32 %v691_v8, %v276_v2  ;;  %v239_v39 = vld [vmem:[#allocation2 + $0x6c0] sm:$0xff]  ;;  %v497_v40 = vadd.f32 %v496_v19, %v101_v9  ;;  %v282_v1 = vld [vmem:[#allocation2 + $0x818] sm:$0xff]  ;;  %v200_v8 = vld [vmem:[#allocation2 + $0x588] sm:$0xff] }
  0x50   :  { %v598_v58 = vadd.f32 %v597_v49, %v192_v43  ;;  %v645_v4 = vadd.f32 %v644_v59, %v234_v52  ;;  %v740_v42 = vadd.f32 %v739_v29, %v319_v23  ;;  %v102_v43 = vld [vmem:[#allocation2 + $0x278] sm:$0xff]  ;;  %v281_v52 = vld [vmem:[#allocation2 + $0x810] sm:$0xff]  ;;  %v444_v54 = vadd.f32 %v443_v33, %v53_v30  ;;  %v151_v59 = vld [vmem:[#allocation2 + $0x400] sm:$0xff] }
  0x51   :  { %v549_v13 = vadd.f32 %v548_v57, %v148_v60  ;;  %v693_v28 = vadd.f32 %v692_v20, %v277_v11  ;;  %v241_v60 = vld [vmem:[#allocation2 + $0x6d0] sm:$0xff]  ;;  %v323_v2 = vld [vmem:[#allocation2 + $0x960] sm:$0xff]  ;;  %v104_v20 = vld [vmem:[#allocation2 + $0x288] sm:$0xff] }
  0x52   :  { %v599_v3 = vadd.f32 %v598_v58, %v193_v51  ;;  %v646_v15 = vadd.f32 %v645_v4, %v235_v62  ;;  %v741_v50 = vadd.f32 %v740_v42, %v320_v32  ;;  %v199_v51 = vld [vmem:[#allocation2 + $0x580] sm:$0xff]  ;;  %v54_v58 = vld [vmem:[#allocation2 + $0xf8] sm:$0xff]  ;;  %v284_v21 = vld [vmem:[#allocation2 + $0x828] sm:$0xff] }
  0x53   :  { %v550_v34 = vadd.f32 %v549_v13, %v149_v10  ;;  %v694_v41 = vadd.f32 %v693_v28, %v278_v18  ;;  %v242_v4 = vld [vmem:[#allocation2 + $0x6d8] sm:$0xff]  ;;  %v283_v9 = vld [vmem:[#allocation2 + $0x820] sm:$0xff]  ;;  %v324_v10 = vld [vmem:[#allocation2 + $0x968] sm:$0xff]  ;;  %v445_v11 = vadd.f32 %v444_v54, %v54_v58 }
  0x54   :  { %v600_v14 = vadd.f32 %v599_v3, %v194_v61  ;;  %v647_v25 = vadd.f32 %v646_v15, %v236_v7  ;;  %v498_v61 = vadd.f32 %v497_v40, %v102_v43  ;;  %v742_v63 = vadd.f32 %v741_v50, %v321_v45  ;;  %v152_v15 = vld [vmem:[#allocation2 + $0x408] sm:$0xff]  ;;  %v325_v22 = vld [vmem:[#allocation2 + $0x970] sm:$0xff]  ;;  %v326_v32 = vld [vmem:[#allocation2 + $0x978] sm:$0xff] }
  0x55   :  { %v695_v49 = vadd.f32 %v694_v41, %v279_v31  ;;  %v551_v55 = vadd.f32 %v550_v34, %v150_v37  ;;  %v105_v29 = vld [vmem:[#allocation2 + $0x290] sm:$0xff]  ;;  %v327_v42 = vld [vmem:[#allocation2 + $0x980] sm:$0xff]  ;;  %v366_v43 = vld [vmem:[#allocation2 + $0xab8] sm:$0xff] }
  0x56   :  { %v601_v24 = vadd.f32 %v600_v14, %v195_v6  ;;  %v648_v36 = vadd.f32 %v647_v25, %v237_v17  ;;  %v743_v7 = vadd.f32 %v742_v63, %v322_v53  ;;  %v55_v14 = vld [vmem:[#allocation2 + $0x100] sm:$0xff]  ;;  %v499_v17 = vadd.f32 %v498_v61, %v103_v0  ;;  %v244_v25 = vld [vmem:[#allocation2 + $0x6e8] sm:$0xff]  ;;  %v201_v30 = vld [vmem:[#allocation2 + $0x590] sm:$0xff] }
  0x57   :  { %v696_v62 = vadd.f32 %v695_v49, %v280_v44  ;;  %v552_v12 = vadd.f32 %v551_v55, %v151_v59  ;;  %v285_v31 = vld [vmem:[#allocation2 + $0x830] sm:$0xff]  ;;  %v446_v33 = vadd.f32 %v445_v11, %v55_v14  ;;  %v367_v44 = vld [vmem:[#allocation2 + $0xac0] sm:$0xff]  ;;  %v368_v49 = vld [vmem:[#allocation2 + $0xac8] sm:$0xff] }
  0x58   :  { %v602_v35 = vadd.f32 %v601_v24, %v196_v16  ;;  %v649_v47 = vadd.f32 %v648_v36, %v238_v27  ;;  %v243_v16 = vld [vmem:[#allocation2 + $0x6e0] sm:$0xff]  ;;  %v744_v19 = vadd.f32 %v743_v7, %v323_v2  ;;  %v56_v24 = vld [vmem:[#allocation2 + $0x108] sm:$0xff]  ;;  %v153_v36 = vld [vmem:[#allocation2 + $0x410] sm:$0xff]  ;;  %v793_v53 = vadd.f32 %v367_v44, %v366_v43 }
  0x59   :  { %v697_v6 = vadd.f32 %v696_v62, %v281_v52  ;;  %v553_v34 = vadd.f32 %v552_v12, %v152_v15  ;;  %v245_v37 = vld [vmem:[#allocation2 + $0x6f0] sm:$0xff]  ;;  %v287_v54 = vld [vmem:[#allocation2 + $0x840] sm:$0xff]  ;;  %v328_v55 = vld [vmem:[#allocation2 + $0x988] sm:$0xff] }
  0x5a   :  { %v603_v46 = vadd.f32 %v602_v35, %v197_v26  ;;  %v650_v57 = vadd.f32 %v649_v47, %v239_v39  ;;  %v745_v28 = vadd.f32 %v744_v19, %v324_v10  ;;  %v500_v39 = vadd.f32 %v499_v17, %v104_v20  ;;  %v202_v47 = vld [vmem:[#allocation2 + $0x598] sm:$0xff]  ;;  %v247_v62 = vld [vmem:[#allocation2 + $0x700] sm:$0xff]  ;;  %v289_v14 = vld [vmem:[#allocation2 + $0x850] sm:$0xff] }
  0x5b   :  { %v698_v18 = vadd.f32 %v697_v6, %v282_v1  ;;  %v554_v58 = vadd.f32 %v553_v34, %v153_v36  ;;  %v154_v61 = vld [vmem:[#allocation2 + $0x418] sm:$0xff]  ;;  %v794_v2 = vadd.f32 %v793_v53, %v368_v49  ;;  %v107_v20 = vld [vmem:[#allocation2 + $0x2a0] sm:$0xff]  ;;  %v108_v44 = vld [vmem:[#allocation2 + $0x2a8] sm:$0xff] }
  0x5c   :  { %v604_v56 = vadd.f32 %v603_v46, %v198_v38  ;;  %v651_v3 = vadd.f32 %v650_v57, %v240_v48  ;;  %v286_v38 = vld [vmem:[#allocation2 + $0x838] sm:$0xff]  ;;  %v746_v41 = vadd.f32 %v745_v28, %v325_v22  ;;  %v57_v46 = vld [vmem:[#allocation2 + $0x110] sm:$0xff]  ;;  %v447_v57 = vadd.f32 %v446_v33, %v56_v24  ;;  %v331_v28 = vld [vmem:[#allocation2 + $0x9a0] sm:$0xff] }
  0x5d   :  { %v699_v27 = vadd.f32 %v698_v18, %v283_v9  ;;  %v246_v48 = vld [vmem:[#allocation2 + $0x6f8] sm:$0xff]  ;;  %v501_v63 = vadd.f32 %v500_v39, %v105_v29  ;;  %v248_v9 = vld [vmem:[#allocation2 + $0x708] sm:$0xff]  ;;  %v555_v18 = vadd.f32 %v554_v58, %v154_v61  ;;  %v249_v22 = vld [vmem:[#allocation2 + $0x710] sm:$0xff] }
  0x5e   :  { %v605_v5 = vadd.f32 %v604_v56, %v199_v51  ;;  %v652_v13 = vadd.f32 %v651_v3, %v241_v60  ;;  %v747_v52 = vadd.f32 %v746_v41, %v326_v32  ;;  %v369_v56 = vld [vmem:[#allocation2 + $0xad0] sm:$0xff]  ;;  %v106_v60 = vld [vmem:[#allocation2 + $0x298] sm:$0xff]  ;;  %v288_v3 = vld [vmem:[#allocation2 + $0x848] sm:$0xff]  ;;  %v448_v17 = vadd.f32 %v447_v57, %v57_v46 }
  0x5f   :  { %v700_v40 = vadd.f32 %v699_v27, %v284_v21  ;;  %v58_v7 = vld [vmem:[#allocation2 + $0x118] sm:$0xff]  ;;  %v155_v21 = vld [vmem:[#allocation2 + $0x420] sm:$0xff]  ;;  %v372_v29 = vld [vmem:[#allocation2 + $0xae8] sm:$0xff] }
  0x60   :  { %v653_v23 = vadd.f32 %v652_v13, %v242_v4  ;;  %v606_v26 = vadd.f32 %v605_v5, %v200_v8  ;;  %v748_v1 = vadd.f32 %v747_v52, %v327_v42  ;;  %v329_v4 = vld [vmem:[#allocation2 + $0x990] sm:$0xff]  ;;  %v370_v5 = vld [vmem:[#allocation2 + $0xad8] sm:$0xff]  ;;  %v203_v8 = vld [vmem:[#allocation2 + $0x5a0] sm:$0xff]  ;;  %v795_v13 = vadd.f32 %v794_v2, %v369_v56 }
  0x61   :  { %v701_v51 = vadd.f32 %v700_v40, %v285_v31  ;;  %v330_v15 = vld [vmem:[#allocation2 + $0x998] sm:$0xff]  ;;  %v59_v31 = vld [vmem:[#allocation2 + $0x120] sm:$0xff]  ;;  %v204_v32 = vld [vmem:[#allocation2 + $0x5a8] sm:$0xff]  ;;  %v449_v41 = vadd.f32 %v448_v17, %v58_v7  ;;  %v556_v42 = vadd.f32 %v555_v18, %v155_v21 }
  0x62   :  { %v654_v35 = vadd.f32 %v653_v23, %v243_v16  ;;  %v607_v50 = vadd.f32 %v606_v26, %v201_v30  ;;  %v749_v12 = vadd.f32 %v748_v1, %v328_v55  ;;  %v371_v16 = vld [vmem:[#allocation2 + $0xae0] sm:$0xff]  ;;  %v502_v23 = vadd.f32 %v501_v63, %v106_v60  ;;  %v290_v27 = vld [vmem:[#allocation2 + $0x858] sm:$0xff]  ;;  %v332_v39 = vld [vmem:[#allocation2 + $0x9a8] sm:$0xff] }
  0x63   :  { %v702_v0 = vadd.f32 %v701_v51, %v286_v38  ;;  %v796_v26 = vadd.f32 %v795_v13, %v370_v5  ;;  %v250_v33 = vld [vmem:[#allocation2 + $0x718] sm:$0xff]  ;;  %v291_v38 = vld [vmem:[#allocation2 + $0x860] sm:$0xff]  ;;  %v373_v40 = vld [vmem:[#allocation2 + $0xaf0] sm:$0xff]  ;;  %v450_v1 = vadd.f32 %v449_v41, %v59_v31 }
  0x64   :  { %v655_v45 = vadd.f32 %v654_v35, %v244_v25  ;;  %v608_v10 = vadd.f32 %v607_v50, %v202_v47  ;;  %v750_v25 = vadd.f32 %v749_v12, %v329_v4  ;;  %v251_v46 = vld [vmem:[#allocation2 + $0x720] sm:$0xff]  ;;  %v503_v47 = vadd.f32 %v502_v23, %v107_v20  ;;  %v292_v51 = vld [vmem:[#allocation2 + $0x868] sm:$0xff]  ;;  %v333_v52 = vld [vmem:[#allocation2 + $0x9b0] sm:$0xff] }
  0x65   :  { %v703_v11 = vadd.f32 %v702_v0, %v287_v54  ;;  %v374_v53 = vld [vmem:[#allocation2 + $0xaf8] sm:$0xff]  ;;  %v60_v55 = vld [vmem:[#allocation2 + $0x128] sm:$0xff]  ;;  %v205_v56 = vld [vmem:[#allocation2 + $0x5b0] sm:$0xff] }
  0x66   :  { %v656_v59 = vadd.f32 %v655_v45, %v245_v37  ;;  %v609_v34 = vadd.f32 %v608_v10, %v203_v8  ;;  %v751_v36 = vadd.f32 %v750_v25, %v330_v15  ;;  %v797_v37 = vadd.f32 %v796_v26, %v371_v16  ;;  %v156_v45 = vld [vmem:[#allocation2 + $0x428] sm:$0xff]  ;;  %v334_v63 = vld [vmem:[#allocation2 + $0x9b8] sm:$0xff]  ;;  %v375_v0 = vld [vmem:[#allocation2 + $0xb00] sm:$0xff] }
  0x67   :  { %v704_v24 = vadd.f32 %v703_v11, %v288_v3  ;;  %v252_v57 = vld [vmem:[#allocation2 + $0x728] sm:$0xff]  ;;  %v557_v2 = vadd.f32 %v556_v42, %v156_v45  ;;  %v109_v4 = vld [vmem:[#allocation2 + $0x2b0] sm:$0xff]  ;;  %v504_v7 = vadd.f32 %v503_v47, %v108_v44  ;;  %v294_v11 = vld [vmem:[#allocation2 + $0x878] sm:$0xff] }
  0x68   :  { %v657_v6 = vadd.f32 %v656_v59, %v246_v48  ;;  %v752_v49 = vadd.f32 %v751_v36, %v331_v28  ;;  %v798_v50 = vadd.f32 %v797_v37, %v372_v29  ;;  %v610_v58 = vadd.f32 %v609_v34, %v204_v32  ;;  %v157_v5 = vld [vmem:[#allocation2 + $0x430] sm:$0xff]  ;;  %v335_v12 = vld [vmem:[#allocation2 + $0x9c0] sm:$0xff]  ;;  %v376_v13 = vld [vmem:[#allocation2 + $0xb08] sm:$0xff] }
  0x69   :  { %v705_v35 = vadd.f32 %v704_v24, %v289_v14  ;;  %v206_v15 = vld [vmem:[#allocation2 + $0x5b8] sm:$0xff]  ;;  %v295_v21 = vld [vmem:[#allocation2 + $0x880] sm:$0xff]  ;;  %v377_v23 = vld [vmem:[#allocation2 + $0xb10] sm:$0xff]  ;;  %v451_v24 = vadd.f32 %v450_v1, %v60_v55  ;;  %v558_v25 = vadd.f32 %v557_v2, %v157_v5 }
  0x6a   :  { %v658_v19 = vadd.f32 %v657_v6, %v247_v62  ;;  %v753_v60 = vadd.f32 %v752_v49, %v332_v39  ;;  %v799_v61 = vadd.f32 %v798_v50, %v373_v40  ;;  %v293_v62 = vld [vmem:[#allocation2 + $0x870] sm:$0xff]  ;;  %v254_v16 = vld [vmem:[#allocation2 + $0x738] sm:$0xff]  ;;  %v611_v17 = vadd.f32 %v610_v58, %v205_v56  ;;  %v296_v34 = vld [vmem:[#allocation2 + $0x888] sm:$0xff] }
  0x6b   :  { %v706_v48 = vadd.f32 %v705_v35, %v290_v27  ;;  %v253_v6 = vld [vmem:[#allocation2 + $0x730] sm:$0xff]  ;;  %v110_v28 = vld [vmem:[#allocation2 + $0x2b8] sm:$0xff]  ;;  %v255_v39 = vld [vmem:[#allocation2 + $0x740] sm:$0xff] }
  0x6c   :  { %v659_v30 = vadd.f32 %v658_v19, %v248_v9  ;;  %v754_v9 = vadd.f32 %v753_v60, %v333_v52  ;;  %v800_v10 = vadd.f32 %v799_v61, %v374_v53  ;;  %v61_v27 = vld [vmem:[#allocation2 + $0x130] sm:$0xff]  ;;  %v158_v29 = vld [vmem:[#allocation2 + $0x438] sm:$0xff]  ;;  %v612_v40 = vadd.f32 %v611_v17, %v206_v15  ;;  %v111_v50 = vld [vmem:[#allocation2 + $0x2c0] sm:$0xff] }
  0x6d   :  { %v707_v59 = vadd.f32 %v706_v48, %v291_v38  ;;  %v337_v35 = vld [vmem:[#allocation2 + $0x9d0] sm:$0xff]  ;;  %v378_v36 = vld [vmem:[#allocation2 + $0xb18] sm:$0xff]  ;;  %v207_v38 = vld [vmem:[#allocation2 + $0x5c0] sm:$0xff]  ;;  %v452_v47 = vadd.f32 %v451_v24, %v61_v27  ;;  %v559_v48 = vadd.f32 %v558_v25, %v158_v29 }
  0x6e   :  { %v660_v43 = vadd.f32 %v659_v30, %v249_v22  ;;  %v755_v19 = vadd.f32 %v754_v9, %v334_v63  ;;  %v801_v20 = vadd.f32 %v800_v10, %v375_v0  ;;  %v336_v22 = vld [vmem:[#allocation2 + $0x9c8] sm:$0xff]  ;;  %v505_v30 = vadd.f32 %v504_v7, %v109_v4  ;;  %v297_v44 = vld [vmem:[#allocation2 + $0x890] sm:$0xff]  ;;  %v338_v45 = vld [vmem:[#allocation2 + $0x9d8] sm:$0xff] }
  0x6f   :  { %v708_v8 = vadd.f32 %v707_v59, %v292_v51  ;;  %v62_v49 = vld [vmem:[#allocation2 + $0x138] sm:$0xff]  ;;  %v159_v51 = vld [vmem:[#allocation2 + $0x440] sm:$0xff]  ;;  %v380_v58 = vld [vmem:[#allocation2 + $0xb28] sm:$0xff] }
  0x70   :  { %v661_v54 = vadd.f32 %v660_v43, %v250_v33  ;;  %v756_v32 = vadd.f32 %v755_v19, %v335_v12  ;;  %v802_v33 = vadd.f32 %v801_v20, %v376_v13  ;;  %v506_v52 = vadd.f32 %v505_v30, %v110_v28  ;;  %v298_v56 = vld [vmem:[#allocation2 + $0x898] sm:$0xff]  ;;  %v208_v60 = vld [vmem:[#allocation2 + $0x5c8] sm:$0xff]  ;;  %v299_v2 = vld [vmem:[#allocation2 + $0x8a0] sm:$0xff] }
  0x71   :  { %v709_v18 = vadd.f32 %v708_v8, %v293_v62  ;;  %v256_v61 = vld [vmem:[#allocation2 + $0x748] sm:$0xff]  ;;  %v613_v62 = vadd.f32 %v612_v40, %v207_v38  ;;  %v381_v4 = vld [vmem:[#allocation2 + $0xb30] sm:$0xff]  ;;  %v453_v5 = vadd.f32 %v452_v47, %v62_v49  ;;  %v63_v7 = vld [vmem:[#allocation2 + $0x140] sm:$0xff] }
  0x72   :  { %v662_v3 = vadd.f32 %v661_v54, %v251_v46  ;;  %v757_v42 = vadd.f32 %v756_v32, %v336_v22  ;;  %v803_v43 = vadd.f32 %v802_v33, %v377_v23  ;;  %v379_v46 = vld [vmem:[#allocation2 + $0xb20] sm:$0xff]  ;;  %v112_v8 = vld [vmem:[#allocation2 + $0x2c8] sm:$0xff]  ;;  %v507_v10 = vadd.f32 %v506_v52, %v111_v50  ;;  %v341_v15 = vld [vmem:[#allocation2 + $0x9f0] sm:$0xff] }
  0x73   :  { %v710_v31 = vadd.f32 %v709_v18, %v294_v11  ;;  %v160_v9 = vld [vmem:[#allocation2 + $0x448] sm:$0xff]  ;;  %v209_v18 = vld [vmem:[#allocation2 + $0x5d0] sm:$0xff]  ;;  %v614_v20 = vadd.f32 %v613_v62, %v208_v60  ;;  %v342_v25 = vld [vmem:[#allocation2 + $0x9f8] sm:$0xff]  ;;  %v454_v27 = vadd.f32 %v453_v5, %v63_v7 }
  0x74   :  { %v663_v14 = vadd.f32 %v662_v3, %v252_v57  ;;  %v758_v54 = vadd.f32 %v757_v42, %v337_v35  ;;  %v804_v55 = vadd.f32 %v803_v43, %v378_v36  ;;  %v339_v57 = vld [vmem:[#allocation2 + $0x9e0] sm:$0xff]  ;;  %v340_v3 = vld [vmem:[#allocation2 + $0x9e8] sm:$0xff]  ;;  %v257_v19 = vld [vmem:[#allocation2 + $0x750] sm:$0xff]  ;;  %v508_v32 = vadd.f32 %v507_v10, %v112_v8 }
  0x75   :  { %v711_v41 = vadd.f32 %v710_v31, %v295_v21  ;;  %v301_v24 = vld [vmem:[#allocation2 + $0x8b0] sm:$0xff]  ;;  %v64_v29 = vld [vmem:[#allocation2 + $0x148] sm:$0xff]  ;;  %v302_v36 = vld [vmem:[#allocation2 + $0x8b8] sm:$0xff]  ;;  %v615_v42 = vadd.f32 %v614_v20, %v209_v18 }
  0x76   :  { %v664_v26 = vadd.f32 %v663_v14, %v253_v6  ;;  %v759_v0 = vadd.f32 %v758_v54, %v338_v45  ;;  %v805_v1 = vadd.f32 %v804_v55, %v379_v46  ;;  %v560_v6 = vadd.f32 %v559_v48, %v159_v51  ;;  %v300_v14 = vld [vmem:[#allocation2 + $0x8a8] sm:$0xff]  ;;  %v113_v30 = vld [vmem:[#allocation2 + $0x2d0] sm:$0xff]  ;;  %v210_v40 = vld [vmem:[#allocation2 + $0x5d8] sm:$0xff] }
  0x77   :  { %v712_v53 = vadd.f32 %v711_v41, %v296_v34  ;;  %v161_v31 = vld [vmem:[#allocation2 + $0x450] sm:$0xff]  ;;  %v384_v38 = vld [vmem:[#allocation2 + $0xb48] sm:$0xff]  ;;  %v258_v41 = vld [vmem:[#allocation2 + $0x758] sm:$0xff]  ;;  %v455_v49 = vadd.f32 %v454_v27, %v64_v29  ;;  %v509_v54 = vadd.f32 %v508_v32, %v113_v30 }
  0x78   :  { %v665_v37 = vadd.f32 %v664_v26, %v254_v16  ;;  %v760_v12 = vadd.f32 %v759_v0, %v339_v57  ;;  %v806_v13 = vadd.f32 %v805_v1, %v380_v58  ;;  %v382_v16 = vld [vmem:[#allocation2 + $0xb38] sm:$0xff]  ;;  %v383_v26 = vld [vmem:[#allocation2 + $0xb40] sm:$0xff]  ;;  %v561_v28 = vadd.f32 %v560_v6, %v160_v9  ;;  %v344_v47 = vld [vmem:[#allocation2 + $0xa08] sm:$0xff] }
  0x79   :  { %v713_v63 = vadd.f32 %v712_v53, %v297_v44  ;;  %v303_v46 = vld [vmem:[#allocation2 + $0x8c0] sm:$0xff]  ;;  %v385_v48 = vld [vmem:[#allocation2 + $0xb50] sm:$0xff]  ;;  %v114_v52 = vld [vmem:[#allocation2 + $0x2d8] sm:$0xff]  ;;  %v616_v0 = vadd.f32 %v615_v42, %v210_v40 }
  0x7a   :  { %v666_v59 = vadd.f32 %v665_v37, %v255_v39  ;;  %v761_v22 = vadd.f32 %v760_v12, %v340_v3  ;;  %v807_v23 = vadd.f32 %v806_v13, %v381_v4  ;;  %v343_v37 = vld [vmem:[#allocation2 + $0xa00] sm:$0xff]  ;;  %v562_v50 = vadd.f32 %v561_v28, %v161_v31  ;;  %v65_v51 = vld [vmem:[#allocation2 + $0x150] sm:$0xff]  ;;  %v162_v53 = vld [vmem:[#allocation2 + $0x458] sm:$0xff] }
  0x7b   :  { %v714_v11 = vadd.f32 %v713_v63, %v298_v56  ;;  %v304_v58 = vld [vmem:[#allocation2 + $0x8c8] sm:$0xff]  ;;  %v386_v60 = vld [vmem:[#allocation2 + $0xb58] sm:$0xff]  ;;  %v211_v62 = vld [vmem:[#allocation2 + $0x5e0] sm:$0xff]  ;;  %v456_v7 = vadd.f32 %v455_v49, %v65_v51  ;;  %v510_v12 = vadd.f32 %v509_v54, %v114_v52 }
  0x7c   :  { %v667_v17 = vadd.f32 %v666_v59, %v256_v61  ;;  %v762_v34 = vadd.f32 %v761_v22, %v341_v15  ;;  %v808_v35 = vadd.f32 %v807_v23, %v382_v16  ;;  %v345_v59 = vld [vmem:[#allocation2 + $0xa10] sm:$0xff]  ;;  %v259_v63 = vld [vmem:[#allocation2 + $0x760] sm:$0xff]  ;;  %v346_v5 = vld [vmem:[#allocation2 + $0xa18] sm:$0xff]  ;;  %v563_v8 = vadd.f32 %v562_v50, %v162_v53 }
  0x7d   :  { %v715_v21 = vadd.f32 %v714_v11, %v299_v2  ;;  %v305_v4 = vld [vmem:[#allocation2 + $0x8d0] sm:$0xff]  ;;  %v387_v6 = vld [vmem:[#allocation2 + $0xb60] sm:$0xff]  ;;  %v66_v9 = vld [vmem:[#allocation2 + $0x158] sm:$0xff]  ;;  %v617_v22 = vadd.f32 %v616_v0, %v211_v62 }
  0x7e   :  { %v668_v39 = vadd.f32 %v667_v17, %v257_v19  ;;  %v763_v44 = vadd.f32 %v762_v34, %v342_v25  ;;  %v809_v45 = vadd.f32 %v808_v35, %v383_v26  ;;  %v115_v10 = vld [vmem:[#allocation2 + $0x2e0] sm:$0xff]  ;;  %v306_v16 = vld [vmem:[#allocation2 + $0x8d8] sm:$0xff]  ;;  %v388_v18 = vld [vmem:[#allocation2 + $0xb68] sm:$0xff]  ;;  %v457_v29 = vadd.f32 %v456_v7, %v66_v9 }
  0x7f   :  { %v716_v33 = vadd.f32 %v715_v21, %v300_v14  ;;  %v163_v11 = vld [vmem:[#allocation2 + $0x460] sm:$0xff]  ;;  %v212_v20 = vld [vmem:[#allocation2 + $0x5e8] sm:$0xff]  ;;  %v389_v28 = vld [vmem:[#allocation2 + $0xb70] sm:$0xff]  ;;  %v511_v34 = vadd.f32 %v510_v12, %v115_v10 }
  0x80   :  { %v764_v56 = vadd.f32 %v763_v44, %v343_v37  ;;  %v810_v57 = vadd.f32 %v809_v45, %v384_v38  ;;  %v669_v61 = vadd.f32 %v668_v39, %v258_v41  ;;  %v347_v17 = vld [vmem:[#allocation2 + $0xa20] sm:$0xff]  ;;  %v260_v21 = vld [vmem:[#allocation2 + $0x768] sm:$0xff]  ;;  %v564_v30 = vadd.f32 %v563_v8, %v163_v11  ;;  %v349_v39 = vld [vmem:[#allocation2 + $0xa30] sm:$0xff] }
  0x81   :  { %v717_v43 = vadd.f32 %v716_v33, %v301_v24  ;;  %v307_v26 = vld [vmem:[#allocation2 + $0x8e0] sm:$0xff]  ;;  %v348_v27 = vld [vmem:[#allocation2 + $0xa28] sm:$0xff]  ;;  %v390_v40 = vld [vmem:[#allocation2 + $0xb78] sm:$0xff]  ;;  %v618_v44 = vadd.f32 %v617_v22, %v212_v20 }
  0x82   :  { %v765_v2 = vadd.f32 %v764_v56, %v344_v47  ;;  %v811_v3 = vadd.f32 %v810_v57, %v385_v48  ;;  %v670_v19 = vadd.f32 %v669_v61, %v259_v63  ;;  %v67_v31 = vld [vmem:[#allocation2 + $0x160] sm:$0xff]  ;;  %v116_v32 = vld [vmem:[#allocation2 + $0x2e8] sm:$0xff]  ;;  %v213_v42 = vld [vmem:[#allocation2 + $0x5f0] sm:$0xff] }
  0x83   :  { %v718_v55 = vadd.f32 %v717_v43, %v302_v36  ;;  %v164_v33 = vld [vmem:[#allocation2 + $0x468] sm:$0xff]  ;;  %v261_v43 = vld [vmem:[#allocation2 + $0x770] sm:$0xff]  ;;  %v350_v49 = vld [vmem:[#allocation2 + $0xa38] sm:$0xff]  ;;  %v458_v51 = vadd.f32 %v457_v29, %v67_v31  ;;  %v512_v56 = vadd.f32 %v511_v34, %v116_v32 }
  0x84   :  { %v766_v14 = vadd.f32 %v765_v2, %v345_v59  ;;  %v812_v15 = vadd.f32 %v811_v3, %v386_v60  ;;  %v308_v38 = vld [vmem:[#allocation2 + $0x8e8] sm:$0xff]  ;;  %v671_v41 = vadd.f32 %v670_v19, %v260_v21  ;;  %v309_v48 = vld [vmem:[#allocation2 + $0x8f0] sm:$0xff]  ;;  %v391_v50 = vld [vmem:[#allocation2 + $0xb80] sm:$0xff]  ;;  %v565_v52 = vadd.f32 %v564_v30, %v164_v33 }
  0x85   :  { %v719_v1 = vadd.f32 %v718_v55, %v303_v46  ;;  %v68_v53 = vld [vmem:[#allocation2 + $0x168] sm:$0xff]  ;;  %v117_v54 = vld [vmem:[#allocation2 + $0x2f0] sm:$0xff]  ;;  %v310_v60 = vld [vmem:[#allocation2 + $0x8f8] sm:$0xff] }
  0x86   :  { %v767_v24 = vadd.f32 %v766_v14, %v346_v5  ;;  %v813_v25 = vadd.f32 %v812_v15, %v387_v6  ;;  %v165_v55 = vld [vmem:[#allocation2 + $0x470] sm:$0xff]  ;;  %v351_v61 = vld [vmem:[#allocation2 + $0xa40] sm:$0xff]  ;;  %v392_v62 = vld [vmem:[#allocation2 + $0xb88] sm:$0xff]  ;;  %v672_v63 = vadd.f32 %v671_v41, %v261_v43  ;;  %v459_v8 = vadd.f32 %v458_v51, %v68_v53 }
  0x87   :  { %v720_v13 = vadd.f32 %v719_v1, %v304_v58  ;;  %v262_v0 = vld [vmem:[#allocation2 + $0x778] sm:$0xff]  ;;  %v619_v1 = vadd.f32 %v618_v44, %v213_v42  ;;  %v352_v6 = vld [vmem:[#allocation2 + $0xa48] sm:$0xff]  ;;  %v393_v7 = vld [vmem:[#allocation2 + $0xb90] sm:$0xff]  ;;  %v566_v9 = vadd.f32 %v565_v52, %v165_v55 }
  0x88   :  { %v768_v36 = vadd.f32 %v767_v24, %v347_v17  ;;  %v814_v37 = vadd.f32 %v813_v25, %v388_v18  ;;  %v214_v5 = vld [vmem:[#allocation2 + $0x5f8] sm:$0xff]  ;;  %v69_v10 = vld [vmem:[#allocation2 + $0x170] sm:$0xff]  ;;  %v311_v17 = vld [vmem:[#allocation2 + $0x900] sm:$0xff]  ;;  %v673_v20 = vadd.f32 %v672_v63, %v262_v0 }
  0x89   :  { %v721_v23 = vadd.f32 %v720_v13, %v305_v4  ;;  %v118_v11 = vld [vmem:[#allocation2 + $0x2f8] sm:$0xff]  ;;  %v513_v13 = vadd.f32 %v512_v56, %v117_v54  ;;  %v353_v18 = vld [vmem:[#allocation2 + $0xa50] sm:$0xff]  ;;  %v263_v21 = vld [vmem:[#allocation2 + $0x780] sm:$0xff]  ;;  %v620_v22 = vadd.f32 %v619_v1, %v214_v5 }
  0x8a   :  { %v769_v46 = vadd.f32 %v768_v36, %v348_v27  ;;  %v815_v47 = vadd.f32 %v814_v37, %v389_v28  ;;  %v166_v12 = vld [vmem:[#allocation2 + $0x478] sm:$0xff]  ;;  %v215_v25 = vld [vmem:[#allocation2 + $0x600] sm:$0xff]  ;;  %v460_v28 = vadd.f32 %v459_v8, %v69_v10  ;;  %v312_v37 = vld [vmem:[#allocation2 + $0x908] sm:$0xff] }
  0x8b   :  { %v722_v35 = vadd.f32 %v721_v23, %v306_v16  ;;  %v394_v19 = vld [vmem:[#allocation2 + $0xb98] sm:$0xff]  ;;  %v395_v27 = vld [vmem:[#allocation2 + $0xba0] sm:$0xff]  ;;  %v567_v29 = vadd.f32 %v566_v9, %v166_v12  ;;  %v514_v33 = vadd.f32 %v513_v13, %v118_v11  ;;  %v264_v41 = vld [vmem:[#allocation2 + $0x788] sm:$0xff]  ;;  %v621_v42 = vadd.f32 %v620_v22, %v215_v25 }
  0x8c   :  { %v770_v58 = vadd.f32 %v769_v46, %v349_v39  ;;  %v816_v59 = vadd.f32 %v815_v47, %v390_v40  ;;  %v70_v30 = vld [vmem:[#allocation2 + $0x178] sm:$0xff]  ;;  %v119_v31 = vld [vmem:[#allocation2 + $0x300] sm:$0xff]  ;;  %v396_v39 = vld [vmem:[#allocation2 + $0xba8] sm:$0xff]  ;;  %v674_v40 = vadd.f32 %v673_v20, %v263_v21 }
  0x8d   :  { %v723_v45 = vadd.f32 %v722_v35, %v307_v26  ;;  %v354_v26 = vld [vmem:[#allocation2 + $0xa58] sm:$0xff]  ;;  %v167_v32 = vld [vmem:[#allocation2 + $0x480] sm:$0xff]  ;;  %v356_v46 = vld [vmem:[#allocation2 + $0xa68] sm:$0xff]  ;;  %v515_v53 = vadd.f32 %v514_v33, %v119_v31 }
  0x8e   :  { %v771_v3 = vadd.f32 %v770_v58, %v350_v49  ;;  %v817_v4 = vadd.f32 %v816_v59, %v391_v50  ;;  %v397_v47 = vld [vmem:[#allocation2 + $0xbb0] sm:$0xff]  ;;  %v568_v49 = vadd.f32 %v567_v29, %v167_v32  ;;  %v71_v50 = vld [vmem:[#allocation2 + $0x180] sm:$0xff]  ;;  %v120_v51 = vld [vmem:[#allocation2 + $0x308] sm:$0xff] }
  0x8f   :  { %v724_v57 = vadd.f32 %v723_v45, %v308_v38  ;;  %v355_v38 = vld [vmem:[#allocation2 + $0xa60] sm:$0xff]  ;;  %v216_v45 = vld [vmem:[#allocation2 + $0x608] sm:$0xff]  ;;  %v357_v58 = vld [vmem:[#allocation2 + $0xa70] sm:$0xff] }
  0x90   :  { %v772_v15 = vadd.f32 %v771_v3, %v351_v61  ;;  %v818_v16 = vadd.f32 %v817_v4, %v392_v62  ;;  %v168_v52 = vld [vmem:[#allocation2 + $0x488] sm:$0xff]  ;;  %v398_v59 = vld [vmem:[#allocation2 + $0xbb8] sm:$0xff]  ;;  %v265_v61 = vld [vmem:[#allocation2 + $0x790] sm:$0xff]  ;;  %v622_v62 = vadd.f32 %v621_v42, %v216_v45 }
  0x91   :  { %v725_v2 = vadd.f32 %v724_v57, %v309_v48  ;;  %v461_v48 = vadd.f32 %v460_v28, %v70_v30  ;;  %v313_v57 = vld [vmem:[#allocation2 + $0x910] sm:$0xff]  ;;  %v399_v3 = vld [vmem:[#allocation2 + $0xbc0] sm:$0xff]  ;;  %v569_v5 = vadd.f32 %v568_v49, %v168_v52  ;;  %v314_v11 = vld [vmem:[#allocation2 + $0x918] sm:$0xff] }
  0x92   :  { %v773_v23 = vadd.f32 %v772_v15, %v352_v6  ;;  %v819_v24 = vadd.f32 %v818_v16, %v393_v7  ;;  %v217_v1 = vld [vmem:[#allocation2 + $0x610] sm:$0xff]  ;;  %v516_v7 = vadd.f32 %v515_v53, %v120_v51  ;;  %v359_v12 = vld [vmem:[#allocation2 + $0xa80] sm:$0xff]  ;;  %v400_v13 = vld [vmem:[#allocation2 + $0xbc8] sm:$0xff] }
  0x93   :  { %v726_v14 = vadd.f32 %v725_v2, %v310_v60  ;;  %v675_v60 = vadd.f32 %v674_v40, %v264_v41  ;;  %v358_v2 = vld [vmem:[#allocation2 + $0xa78] sm:$0xff]  ;;  %v462_v4 = vadd.f32 %v461_v48, %v71_v50  ;;  %v169_v6 = vld [vmem:[#allocation2 + $0x490] sm:$0xff]  ;;  %v623_v16 = vadd.f32 %v622_v62, %v217_v1  ;;  %v360_v20 = vld [vmem:[#allocation2 + $0xa88] sm:$0xff] }
  0x94   :  { %v774_v35 = vadd.f32 %v773_v23, %v353_v18  ;;  %v820_v36 = vadd.f32 %v819_v24, %v394_v19  ;;  %v266_v15 = vld [vmem:[#allocation2 + $0x798] sm:$0xff]  ;;  %v401_v21 = vld [vmem:[#allocation2 + $0xbd0] sm:$0xff]  ;;  %v570_v23 = vadd.f32 %v569_v5, %v169_v6  ;;  %v517_v24 = vrot.slane %v516_v7, 4  ;;  %v315_v28 = vld [vmem:[#allocation2 + $0x920] sm:$0xff] }
  0x95   :  { %v727_v34 = vadd.f32 %v726_v14, %v311_v17  ;;  %v676_v14 = vadd.f32 %v675_v60, %v265_v61  ;;  %v218_v19 = vld [vmem:[#allocation2 + $0x618] sm:$0xff]  ;;  %v463_v22 = vrot.slane %v462_v4, 4  ;;  %v361_v29 = vld [vmem:[#allocation2 + $0xa90] sm:$0xff]  ;;  %v267_v32 = vld [vmem:[#allocation2 + $0x7a0] sm:$0xff] }
  0x96   :  { %v775_v43 = vadd.f32 %v774_v35, %v354_v26  ;;  %v821_v44 = vadd.f32 %v820_v36, %v395_v27  ;;  %v402_v30 = vld [vmem:[#allocation2 + $0xbd8] sm:$0xff]  ;;  %v624_v33 = vadd.f32 %v623_v16, %v218_v19  ;;  %v518_v40 = vadd.f32 %v517_v24, %v516_v7  ;;  %v363_v45 = vld [vmem:[#allocation2 + $0xaa0] sm:$0xff]  ;;  %v364_v51 = vld [vmem:[#allocation2 + $0xaa8] sm:$0xff] }
  0x97   :  { %v728_v54 = vadd.f32 %v727_v34, %v312_v37  ;;  %v677_v31 = vadd.f32 %v676_v14, %v266_v15  ;;  %v362_v36 = vld [vmem:[#allocation2 + $0xa98] sm:$0xff]  ;;  %v403_v37 = vld [vmem:[#allocation2 + $0xbe0] sm:$0xff]  ;;  %v405_v52 = vld [vmem:[#allocation2 + $0xbf0] sm:$0xff] }
  0x98   :  { %v776_v55 = vadd.f32 %v775_v43, %v355_v38  ;;  %v822_v56 = vadd.f32 %v821_v44, %v396_v39  ;;  %v464_v38 = vadd.f32 %v463_v22, %v462_v4  ;;  %v571_v39 = vrot.slane %v570_v23, 4  ;;  %v316_v44 = vld [vmem:[#allocation2 + $0x928] sm:$0xff]  ;;  %v406_v60 = vld [vmem:[#allocation2 + $0xbf8] sm:$0xff]  ;;  %v407_v1 = vld [vmem:[#allocation2 + $0xc00] sm:$0xff] }
  0x99   :  { %v729_v8 = vadd.f32 %v728_v54, %v313_v57  ;;  %v625_v48 = vrot.slane %v624_v33, 4  ;;  %v410_v19 = vld [vmem:[#allocation2 + $0xc18] sm:$0xff] }
  0x9a   :  { %v777_v63 = vadd.f32 %v776_v55, %v356_v46  ;;  %v823_v0 = vadd.f32 %v822_v56, %v397_v47  ;;  %v404_v46 = vld [vmem:[#allocation2 + $0xbe8] sm:$0xff]  ;;  %v678_v47 = vadd.f32 %v677_v31, %v267_v32  ;;  %v465_v53 = vrot.slane %v464_v38, 2 }
  0x9b   :  { %v730_v25 = vadd.f32 %v729_v8, %v314_v11  ;;  %v572_v54 = vadd.f32 %v571_v39, %v570_v23  ;;  %v519_v55 = vrot.slane %v518_v40, 2  ;;  %v626_v62 = vadd.f32 %v625_v48, %v624_v33  ;;  %v408_v8 = vld [vmem:[#allocation2 + $0xc08] sm:$0xff]  ;;  %v411_v23 = vld [vmem:[#allocation2 + $0xc20] sm:$0xff] }
  0x9c   :  { %v778_v9 = vadd.f32 %v777_v63, %v357_v58  ;;  %v824_v10 = vadd.f32 %v823_v0, %v398_v59  ;;  %v365_v59 = vld [vmem:[#allocation2 + $0xab0] sm:$0xff]  ;;  %v679_v61 = vrot.slane %v678_v47, 4 }
  0x9d   :  { %v731_v41 = vadd.f32 %v730_v25, %v315_v28  ;;  %v520_v4 = vadd.f32 %v519_v55, %v518_v40  ;;  %v414_v40 = vld [vmem:[#allocation2 + $0xc38] sm:$0xff] }
  0x9e   :  { %v779_v17 = vadd.f32 %v778_v9, %v358_v2  ;;  %v825_v18 = vadd.f32 %v824_v10, %v399_v3  ;;  %v466_v2 = vadd.f32 %v465_v53, %v464_v38  ;;  %v573_v3 = vrot.slane %v572_v54, 2 }
  0x9f   :  { %v732_v56 = vadd.f32 %v731_v41, %v316_v44  ;;  %v680_v9 = vadd.f32 %v679_v61, %v678_v47  ;;  %v627_v10 = vrot.slane %v626_v62, 2  ;;  %v521_v16 = vrot.slane %v520_v4, 1 }
  0xa0   :  { %v780_v26 = vadd.f32 %v779_v17, %v359_v12  ;;  %v826_v27 = vadd.f32 %v825_v18, %v400_v13  ;;  %v409_v12 = vld [vmem:[#allocation2 + $0xc10] sm:$0xff]  ;;  %v574_v13 = vadd.f32 %v573_v3, %v572_v54  ;;  %v467_v15 = vrot.slane %v466_v2, 1 }
  0xa1   :  { %v733_v5 = vrot.slane %v732_v56, 4 }
  0xa2   :  { %v781_v34 = vadd.f32 %v780_v26, %v360_v20  ;;  %v827_v35 = vadd.f32 %v826_v27, %v401_v21  ;;  %v681_v20 = vrot.slane %v680_v9, 2  ;;  %v628_v21 = vadd.f32 %v627_v10, %v626_v62 }
  0xa3   :  { %v734_v17 = vadd.f32 %v733_v5, %v732_v56  ;;  %v575_v24 = vrot.slane %v574_v13, 1  ;;  %v468_v26 = vadd.f32 %v467_v15, %v466_v2  ;;  %v522_v27 = vadd.f32 %v521_v16, %v520_v4 }
  0xa4   :  { %v782_v42 = vadd.f32 %v781_v34, %v361_v29  ;;  %v828_v43 = vadd.f32 %v827_v35, %v402_v30  ;;  %v412_v30 = vld [vmem:[#allocation2 + $0xc28] sm:$0xff]  ;;  %v682_v31 = vadd.f32 %v681_v20, %v680_v9  ;;  %v629_v32 = vrot.slane %v628_v21, 1  ;;  %v413_v34 = vld [vmem:[#allocation2 + $0xc30] sm:$0xff] }
  0xa5   :  { %v735_v28 = vrot.slane %v734_v17, 2  ;;  %v576_v35 = vadd.f32 %v575_v24, %v574_v13  ;;  %v856_v39 = vsel %vm855_vm0, %v522_v27, %v468_v26 }
  0xa6   :  { %v783_v49 = vadd.f32 %v782_v42, %v362_v36  ;;  %v829_v50 = vadd.f32 %v828_v43, %v403_v37  ;;  %v683_v41 = vrot.slane %v682_v31, 1  ;;  %v630_v42 = vadd.f32 %v629_v32, %v628_v21 }
  0xa7   :  { %v736_v37 = vadd.f32 %v735_v28, %v734_v17 }
  0xa8   :  { %v784_v57 = vadd.f32 %v783_v49, %v363_v45  ;;  %v830_v58 = vadd.f32 %v829_v50, %v404_v46  ;;  %v858_v45 = vsel %vm857_vm1, %v576_v35, %v856_v39  ;;  %v684_v48 = vadd.f32 %v683_v41, %v682_v31 }
  0xa9   :  { %v737_v46 = vrot.slane %v736_v37, 1  ;;  %v860_v50 = vsel %vm859_vm2, %v630_v42, %v858_v45 }
  0xaa   :  { %v785_v63 = vadd.f32 %v784_v57, %v364_v51  ;;  %v831_v0 = vadd.f32 %v830_v58, %v405_v52  ;;  %v862_v54 = vsel %vm861_vm3, %v684_v48, %v860_v50 }
  0xab   :  { %v738_v52 = vadd.f32 %v737_v46, %v736_v37 }
  0xac   :  { %v786_v6 = vadd.f32 %v785_v63, %v365_v59  ;;  %v832_v7 = vadd.f32 %v831_v0, %v406_v60 }
  0xad   :  { %v864_v58 = vsel %vm863_vm4, %v738_v52, %v862_v54 }
  0xae   :  { %v833_v11 = vadd.f32 %v832_v7, %v407_v1  ;;  %v787_v14 = vrot.slane %v786_v6, 4 }
  0xb0   :  { %v834_v18 = vadd.f32 %v833_v11, %v408_v8  ;;  %v788_v25 = vadd.f32 %v787_v14, %v786_v6 }
  0xb2   :  { %v835_v22 = vadd.f32 %v834_v18, %v409_v12  ;;  %v789_v36 = vrot.slane %v788_v25, 2 }
  0xb4   :  { %v836_v29 = vadd.f32 %v835_v22, %v410_v19  ;;  %v790_v44 = vadd.f32 %v789_v36, %v788_v25 }
  0xb6   :  { %v837_v33 = vadd.f32 %v836_v29, %v411_v23  ;;  %v791_v51 = vrot.slane %v790_v44, 1 }
  0xb8   :  { %v838_v38 = vadd.f32 %v837_v33, %v412_v30  ;;  %v792_v56 = vadd.f32 %v791_v51, %v790_v44 }
  0xba   :  { %v839_v43 = vadd.f32 %v838_v38, %v413_v34  ;;  %v866_v60 = vsel %vm865_vm5, %v792_v56, %v864_v58 }
  0xbc   :  { %v840_v47 = vadd.f32 %v839_v43, %v414_v40 }
  0xbe   :  { %v841_v49 = vrot.slane %v840_v47, 4 }
  0xc0   :  { %v842_v53 = vadd.f32 %v841_v49, %v840_v47 }
  0xc2   :  { %v843_v55 = vrot.slane %v842_v53, 2 }
  0xc4   :  { %v844_v57 = vadd.f32 %v843_v55, %v842_v53 }
  0xc6   :  { %v845_v59 = vrot.slane %v844_v57, 1 }
  0xc8   :  { %v846_v61 = vadd.f32 %v845_v59, %v844_v57 }
  0xca   :  { %v868_v62 = vsel %vm867_vm6, %v846_v61, %v866_v60 }
  0xcb   :  { %870 = vadd.xlane.f32.xlu0 %v868_v62 }
 0x158   :  { %v871_v63 = vpop.xlane.xlu0 %870 }
 0x159   :  { %v872_v0 = vmul.f32 1.9929847e-05, %v871_v63 }
 0x15b   :  { %873 = vst [vmem:[#allocation5] sm:$0xff] %v872_v0 }
 0x15c   :  { %926 = shalt.err (!%p923_p12)
}
 0x15d   :  { %s927_s24 = scalar_lea.hbm %s980_s1, 128 }
 0x15e   :  { %p928_p13 = scmp.ne.s32.totalorder %s980_s1, %s927_s24  ;;  %p931_p0 = scmp.lt.u32.totalorder %s927_s24, %s980_s1 }
 0x160   :  { %p933_p1 = pnand %p931_p0, %p928_p13 }
 0x162   :  { %936 = shalt.err (!%p933_p1)
}
 0x163   :  { %883 = dma.vmem_to_hbm [thread:$0]  %s881_s20, 128, %s980_s1, [#allocation4]  }
 0x164   :  { %939 = dma.done.wait [#allocation4], 128  }
 0x165   :  { %940 = vsyncadd [#allocation4], 4294967168 }
 0x166   :  { %887 = vsyncpa [#allocation3], 1 }
 0x167   :  { %888 = vsyncpa [#allocation4], 1 }

</bundles_post_ra>
